<compile_context>
chip_gen: v7x
topology: tpu7x:2x2x1
jax: 0.10.0
libtpu: 0.0.40
codegen_flags: <defaults>
</compile_context>

<pallas_src>
import functools

import jax
import jax.numpy as jnp
from jax.experimental import pallas as pl
from jax.experimental.pallas import tpu as pltpu


def _sae_kernel(x_ref, w_enc_t_ref, b_enc_ref, w_dec_ref, b_dec_ref,
                xhat_ref, z_ref, xc_ref, acc_ref=None, *, compute_dtype):
    h = pl.program_id(1)
    n_h = pl.num_programs(1)

    # f32 output -> accumulate straight into the resident output block.
    acc = xhat_ref if acc_ref is None else acc_ref

    @pl.when(h == 0)
    def _():
        # Hoisted: pre-bias subtract + compute-dtype cast happen once per batch
        # tile (not once per hidden tile).
        xc_ref[...] = (x_ref[...] - b_dec_ref[...]).astype(compute_dtype)
        acc[...] = jnp.zeros_like(acc)

    # Encoder tile: z = relu(xc @ W_enc_tile^T + b_enc_tile).
    # W_enc was pre-transposed to [D, H] in the wrapper -> canonical MXU matmul.
    z = jnp.dot(xc_ref[...], w_enc_t_ref[...],
                preferred_element_type=jnp.float32)               # [tb, th] f32
    z = jnp.maximum(z + b_enc_ref[...], 0.0)                      # f32 VPU math
    z_c = z.astype(compute_dtype)                                 # cast once
    z_ref[...] = z.astype(z_ref.dtype)

    # Decoder accumulation (f32) into the on-chip accumulator.
    acc[...] += jnp.dot(z_c, w_dec_ref[...],
                        preferred_element_type=jnp.float32)       # [tb, D]

    # Finalize once per batch tile: add b_dec, cast, store.
    @pl.when(h == n_h - 1)
    def _():
        xhat_ref[...] = (acc[...] + b_dec_ref[...]).astype(xhat_ref.dtype)


def _round_up(v, m):
    return -(-v // m) * m


def sparse_autoencoder_forward(x, w_enc, b_enc, w_dec, b_dec, *,
                               tile_b=None, tile_h=None,
                               compute_dtype=jnp.bfloat16,
                               z_dtype=None):
    """SAE forward pass in one Pallas kernel.

    x:     [B, D] float32
    w_enc: [H, D] float32  (PyTorch Linear weight layout)
    b_enc: [H]    float32
    w_dec: [H, D] float32
    b_dec: [D]    float32
    returns (x_hat [B, D], z [B, H])

    compute_dtype=bf16 (default) loosens tolerances slightly vs the f32
    PyTorch reference; pass compute_dtype=jnp.float32 for bit-closer results.
    """
    B, D = x.shape
    H = w_enc.shape[0]
    out_dtype = x.dtype
    z_dtype = z_dtype if z_dtype is not None else x.dtype

    wbytes = jnp.dtype(compute_dtype).itemsize
    cbytes = wbytes
    zbytes = jnp.dtype(z_dtype).itemsize
    obytes = jnp.dtype(out_dtype).itemsize
    use_acc_scratch = jnp.dtype(out_dtype) != jnp.dtype(jnp.float32)

    # ---- generation-aware VMEM budget -------------------------------------
    vmem_cap = 64 << 20                       # conservative default (v7x TC)
    try:
        info = pltpu.get_tpu_info()
        vmem_cap = int(getattr(info, "vmem_capacity_bytes", vmem_cap))
    except Exception:
        pass
    vmem_limit = (vmem_cap * 3) // 4          # ~48 MiB v7x / ~96 MiB v5e,v6e
    vmem_budget = int(vmem_limit * 0.8)       # headroom for Mosaic scratch

    # ---- tile selection (aligned, VMEM-fitted) -----------------------------
    tb_req = 256 if tile_b is None else tile_b
    tb = min(_round_up(tb_req, 8), _round_up(B, 8))
    tb = max(8, (tb // 8) * 8)
    # Keep >= 2 batch tiles when the batch allows it (megacore split on v7x).
    if _round_up(B, 8) >= 16 and _round_up(B, 8) // tb < 2:
        tb = max(8, ((_round_up(B, 8) // 2) // 8) * 8)
    B_pad = _round_up(B, tb)

    H_pad128 = _round_up(H, 128)

    def est(tb_, th_):
        e = 2 * tb_ * D * 4                  # x in (f32, double-buffered)
        e += 2 * th_ * D * wbytes            # W_enc^T tile
        e += 2 * th_ * 4                     # b_enc tile
        e += 2 * th_ * D * wbytes            # W_dec tile
        e += 2 * D * 4                       # b_dec
        e += 2 * tb_ * D * obytes            # x_hat out
        e += 2 * tb_ * th_ * zbytes          # z out
        e += tb_ * D * cbytes                # xc scratch
        if use_acc_scratch:
            e += tb_ * D * 4                 # f32 accumulator scratch
        return e

    if tile_h is None:
        # Fast path: keep the whole (padded) hidden dim resident so weights
        # have constant block indices (DMA'd from HBM once for the call).
        th = H_pad128 if est(tb, H_pad128) <= vmem_budget else min(512, H_pad128)
    else:
        th = min(_round_up(tile_h, 128), H_pad128)
    th = max(128, (th // 128) * 128)
    while est(tb, th) > vmem_budget and th > 128:
        th -= 128
    while est(tb, th) > vmem_budget and tb > 8:
        tb = max(8, ((tb // 2) // 8) * 8)
        B_pad = _round_up(B, tb)
    H_pad = _round_up(H, th)

    # ---- one-time HBM-side relayout / cast / padding -----------------------
    # For repeated calls, callers should pre-transpose / pre-cast the weights.
    w_enc_t = w_enc.T.astype(compute_dtype)          # [D, H] bf16 (canonical)
    w_dec_c = w_dec.astype(compute_dtype)            # [H, D] bf16
    b_enc_p = b_enc.astype(jnp.float32)
    if B_pad != B:
        x = jnp.pad(x, ((0, B_pad - B), (0, 0)))
    if H_pad != H:
        w_enc_t = jnp.pad(w_enc_t, ((0, 0), (0, H_pad - H)))
        b_enc_p = jnp.pad(b_enc_p, (0, H_pad - H))
        w_dec_c = jnp.pad(w_dec_c, ((0, H_pad - H), (0, 0)))
    b_enc_2d = b_enc_p.reshape(1, H_pad)
    b_dec_2d = b_dec.reshape(1, D).astype(jnp.float32)

    grid = (B_pad // tb, H_pad // th)

    kernel = functools.partial(_sae_kernel, compute_dtype=compute_dtype)

    scratch_shapes = [pltpu.VMEM((tb, D), compute_dtype)]      # cached xc
    if use_acc_scratch:
        scratch_shapes.append(pltpu.VMEM((tb, D), jnp.float32))  # f32 acc

    x_hat, z = pl.pallas_call(
        kernel,
        out_shape=(
            jax.ShapeDtypeStruct((B_pad, D), out_dtype),       # x_hat
            jax.ShapeDtypeStruct((B_pad, H_pad), z_dtype),     # z
        ),
        grid_spec=pltpu.PrefetchScalarGridSpec(
            num_scalar_prefetch=0,
            grid=grid,
            in_specs=[
                pl.BlockSpec((tb, D), lambda b, h: (b, 0)),    # x (resident over h)
                pl.BlockSpec((D, th), lambda b, h: (0, h)),    # W_enc^T tile
                pl.BlockSpec((1, th), lambda b, h: (0, h)),    # b_enc tile
                pl.BlockSpec((th, D), lambda b, h: (h, 0)),    # W_dec tile
                pl.BlockSpec((1, D),  lambda b, h: (0, 0)),    # b_dec (resident)
            ],
            out_specs=[
                pl.BlockSpec((tb, D),  lambda b, h: (b, 0)),   # x_hat (accumulated)
                pl.BlockSpec((tb, th), lambda b, h: (b, h)),   # z
            ],
            scratch_shapes=scratch_shapes,
        ),
        compiler_params=pltpu.CompilerParams(
            dimension_semantics=("parallel", "arbitrary"),
            vmem_limit_bytes=int(vmem_limit),
        ),
    )(x, w_enc_t, b_enc_2d, w_dec_c, b_dec_2d)

    if B_pad != B or H_pad != H:
        x_hat = x_hat[:B]
        z = z[:B, :H]
    return x_hat, z


def _reference(x, w_enc, b_enc, w_dec, b_dec):
    xc = x - b_dec
    z = jnp.maximum(xc @ w_enc.T + b_enc, 0.0)
    x_hat = z @ w_dec + b_dec
    return x_hat, z


if __name__ == "__main__":
    # Small but lane-dense shapes consistent with the module:
    # batch=16, input_dim=128, hidden_dim=256.
    B, D, H = 16, 128, 256

    key = jax.random.PRNGKey(0)
    kx, kwe, kbe, kwd, kbd = jax.random.split(key, 5)

    x = jax.random.normal(kx, (B, D), dtype=jnp.float32)
    bnd_enc = 1.0 / (D ** 0.5)                       # Linear kaiming bounds
    w_enc = jax.random.uniform(kwe, (H, D), minval=-bnd_enc, maxval=bnd_enc,
                               dtype=jnp.float32)
    b_enc = jax.random.uniform(kbe, (H,), minval=-bnd_enc, maxval=bnd_enc,
                               dtype=jnp.float32)
    bnd_dec = (6.0 / D) ** 0.5                       # kaiming_uniform_ on [H, D]
    w_dec = jax.random.uniform(kwd, (H, D), minval=-bnd_dec, maxval=bnd_dec,
                               dtype=jnp.float32)
    # Module initializes b_dec to zeros; use a nonzero value so the pre-bias
    # subtraction / final add paths are actually exercised.
    b_dec = 0.1 * jax.random.normal(kbd, (D,), dtype=jnp.float32)

    x_hat_ref, z_ref = _reference(x, w_enc, b_enc, w_dec, b_dec)

    # 1) Exact-math path (f32 compute), explicit small tiles -> grid (2, 2):
    #    exercises batch tiling AND the hidden-axis accumulator.
    x_hat, z = sparse_autoencoder_forward(
        x, w_enc, b_enc, w_dec, b_dec,
        tile_b=8, tile_h=128, compute_dtype=jnp.float32)
    jax.block_until_ready((x_hat, z))
    assert jnp.allclose(x_hat, x_hat_ref, atol=1e-4, rtol=1e-4), "x_hat mismatch (f32)"
    assert jnp.allclose(z, z_ref, atol=1e-4, rtol=1e-4), "z mismatch (f32)"

    # 2) Default performance path: bf16 weights/compute, auto tiles with the
    #    weights-resident fast path and >=2 batch tiles for megacore.
    x_hat16, z16 = sparse_autoencoder_forward(x, w_enc, b_enc, w_dec, b_dec)
    jax.block_until_ready((x_hat16, z16))
    assert jnp.allclose(x_hat16, x_hat_ref, atol=5e-2, rtol=5e-2), "x_hat mismatch (bf16)"
    assert jnp.allclose(z16, z_ref, atol=5e-2, rtol=5e-2), "z mismatch (bf16)"

    # 3) Padding path: hidden_dim not a multiple of the 128-lane tile.
    H2 = 200
    w_enc2, b_enc2, w_dec2 = w_enc[:H2], b_enc[:H2], w_dec[:H2]
    xh2, z2 = sparse_autoencoder_forward(
        x, w_enc2, b_enc2, w_dec2, b_dec, compute_dtype=jnp.float32)
    jax.block_until_ready((xh2, z2))
    xh2_ref, z2_ref = _reference(x, w_enc2, b_enc2, w_dec2, b_dec)
    assert jnp.allclose(xh2, xh2_ref, atol=1e-4, rtol=1e-4), "x_hat mismatch (padded H)"
    assert jnp.allclose(z2, z2_ref, atol=1e-4, rtol=1e-4), "z mismatch (padded H)"

    # TODO(synk): loss() (MSE / L1 / L0) is a training-time helper, not part of
    # forward(); it is left to plain JAX.  tied_weights=True decode path is not
    # implemented (module default is untied).
    print("KERNEL_OK")
</pallas_src>

<mosaic_0001>
module attributes {stable_mosaic.version = 11 : i64} {
  func.func @_sae_kernel(%arg0: i32, %arg1: i32, %arg2: memref<8x128xf32, #tpu.memory_space<vmem>>, %arg3: memref<128x128xf32, #tpu.memory_space<vmem>>, %arg4: memref<1x128xf32, #tpu.memory_space<vmem>>, %arg5: memref<128x128xf32, #tpu.memory_space<vmem>>, %arg6: memref<1x128xf32, #tpu.memory_space<vmem>>, %arg7: memref<8x128xf32, #tpu.memory_space<vmem>>, %arg8: memref<8x128xf32, #tpu.memory_space<vmem>>, %arg9: memref<8x128xf32, #tpu.memory_space<vmem>>) attributes {dimension_semantics = [#tpu.dimension_semantics<parallel>, #tpu.dimension_semantics<arbitrary>], iteration_bounds = array<i64: 2, 2>, scalar_prefetch = 0 : i64, scratch_operands = 1 : i64, tpu.core_type = #tpu.core_type<tc>, window_params = [{transform_indices = @transform_0, window_bounds = array<i64: 8, 128>}, {transform_indices = @transform_1, window_bounds = array<i64: 128, 128>}, {transform_indices = @transform_2, window_bounds = array<i64: 1, 128>}, {transform_indices = @transform_3, window_bounds = array<i64: 128, 128>}, {pipeline_mode = #tpu.pipeline_mode<synchronous>, transform_indices = @transform_4, window_bounds = array<i64: 1, 128>}, {transform_indices = @transform_5, window_bounds = array<i64: 8, 128>}, {transform_indices = @transform_6, window_bounds = array<i64: 8, 128>}]} {
    %c0_i32 = arith.constant 0 : i32
    %0 = arith.cmpi eq, %arg1, %c0_i32 : i32
    %1 = arith.extui %0 : i1 to i32
    %c0_i32_0 = arith.constant 0 : i32
    %2 = arith.cmpi ne, %1, %c0_i32_0 : i32
    scf.if %2 {
      %c0_17 = arith.constant 0 : index
      %c0_18 = arith.constant 0 : index
      %20 = vector.load %arg2[%c0_17, %c0_18] : memref<8x128xf32, #tpu.memory_space<vmem>>, vector<8x128xf32>
      %c0_19 = arith.constant 0 : index
      %c0_20 = arith.constant 0 : index
      %21 = vector.load %arg6[%c0_19, %c0_20] : memref<1x128xf32, #tpu.memory_space<vmem>>, vector<1x128xf32>
      %22 = vector.broadcast %21 : vector<1x128xf32> to vector<8x128xf32>
      %23 = arith.subf %20, %22 : vector<8x128xf32>
      %c0_21 = arith.constant 0 : index
      %c0_22 = arith.constant 0 : index
      %24 = vector.load %arg9[%c0_21, %c0_22] : memref<8x128xf32, #tpu.memory_space<vmem>>, vector<8x128xf32>
      tpu.vector_store %arg9[%c0_21, %c0_22], %23 {strides = array<i32>} : memref<8x128xf32, #tpu.memory_space<vmem>>, vector<8x128xf32>,
      %cst_23 = arith.constant 0.000000e+00 : f32
      %25 = vector.broadcast %cst_23 : f32 to vector<8x128xf32>
      %c0_24 = arith.constant 0 : index
      %c0_25 = arith.constant 0 : index
      %26 = vector.load %arg7[%c0_24, %c0_25] : memref<8x128xf32, #tpu.memory_space<vmem>>, vector<8x128xf32>
      tpu.vector_store %arg7[%c0_24, %c0_25], %25 {strides = array<i32>} : memref<8x128xf32, #tpu.memory_space<vmem>>, vector<8x128xf32>,
    } else {
    }
    %c0 = arith.constant 0 : index
    %c0_1 = arith.constant 0 : index
    %3 = vector.load %arg9[%c0, %c0_1] : memref<8x128xf32, #tpu.memory_space<vmem>>, vector<8x128xf32>
    %c0_2 = arith.constant 0 : index
    %c0_3 = arith.constant 0 : index
    %4 = vector.load %arg3[%c0_2, %c0_3] : memref<128x128xf32, #tpu.memory_space<vmem>>, vector<128x128xf32>
    %cst = arith.constant dense<0.000000e+00> : vector<8x128xf32>
    %5 = tpu.matmul %3, %4, %cst {dimension_numbers = #tpu.dot_dimension_numbers<[1], [0], [0], [1], [0, 0, 1, 1], [], []>} : vector<8x128xf32>, vector<128x128xf32>, vector<8x128xf32> -> vector<8x128xf32>
    %c0_4 = arith.constant 0 : index
    %c0_5 = arith.constant 0 : index
    %6 = vector.load %arg4[%c0_4, %c0_5] : memref<1x128xf32, #tpu.memory_space<vmem>>, vector<1x128xf32>
    %7 = vector.broadcast %6 : vector<1x128xf32> to vector<8x128xf32>
    %8 = arith.addf %5, %7 : vector<8x128xf32>
    %cst_6 = arith.constant 0.000000e+00 : f32
    %9 = vector.broadcast %cst_6 : f32 to vector<8x128xf32>
    %10 = arith.maximumf %8, %9 : vector<8x128xf32>
    %c0_7 = arith.constant 0 : index
    %c0_8 = arith.constant 0 : index
    %11 = vector.load %arg8[%c0_7, %c0_8] : memref<8x128xf32, #tpu.memory_space<vmem>>, vector<8x128xf32>
    tpu.vector_store %arg8[%c0_7, %c0_8], %10 {strides = array<i32>} : memref<8x128xf32, #tpu.memory_space<vmem>>, vector<8x128xf32>,
    %c0_9 = arith.constant 0 : index
    %c0_10 = arith.constant 0 : index
    %12 = vector.load %arg7[%c0_9, %c0_10] : memref<8x128xf32, #tpu.memory_space<vmem>>, vector<8x128xf32>
    %c0_11 = arith.constant 0 : index
    %c0_12 = arith.constant 0 : index
    %13 = vector.load %arg5[%c0_11, %c0_12] : memref<128x128xf32, #tpu.memory_space<vmem>>, vector<128x128xf32>
    %cst_13 = arith.constant dense<0.000000e+00> : vector<8x128xf32>
    %14 = tpu.matmul %10, %13, %cst_13 {dimension_numbers = #tpu.dot_dimension_numbers<[1], [0], [0], [1], [0, 0, 1, 1], [], []>} : vector<8x128xf32>, vector<128x128xf32>, vector<8x128xf32> -> vector<8x128xf32>
    %15 = arith.addf %12, %14 : vector<8x128xf32>
    %c0_14 = arith.constant 0 : index
    %c0_15 = arith.constant 0 : index
    %16 = vector.load %arg7[%c0_14, %c0_15] : memref<8x128xf32, #tpu.memory_space<vmem>>, vector<8x128xf32>
    tpu.vector_store %arg7[%c0_14, %c0_15], %15 {strides = array<i32>} : memref<8x128xf32, #tpu.memory_space<vmem>>, vector<8x128xf32>,
    %c1_i32 = arith.constant 1 : i32
    %17 = arith.cmpi eq, %arg1, %c1_i32 : i32
    %18 = arith.extui %17 : i1 to i32
    %c0_i32_16 = arith.constant 0 : i32
    %19 = arith.cmpi ne, %18, %c0_i32_16 : i32
    scf.if %19 {
      %c0_17 = arith.constant 0 : index
      %c0_18 = arith.constant 0 : index
      %20 = vector.load %arg7[%c0_17, %c0_18] : memref<8x128xf32, #tpu.memory_space<vmem>>, vector<8x128xf32>
      %c0_19 = arith.constant 0 : index
      %c0_20 = arith.constant 0 : index
      %21 = vector.load %arg6[%c0_19, %c0_20] : memref<1x128xf32, #tpu.memory_space<vmem>>, vector<1x128xf32>
      %22 = vector.broadcast %21 : vector<1x128xf32> to vector<8x128xf32>
      %23 = arith.addf %20, %22 : vector<8x128xf32>
      %c0_21 = arith.constant 0 : index
      %c0_22 = arith.constant 0 : index
      %24 = vector.load %arg7[%c0_21, %c0_22] : memref<8x128xf32, #tpu.memory_space<vmem>>, vector<8x128xf32>
      tpu.vector_store %arg7[%c0_21, %c0_22], %23 {strides = array<i32>} : memref<8x128xf32, #tpu.memory_space<vmem>>, vector<8x128xf32>,
    } else {
    }
    return
  }
  func.func @transform_0(%arg0: i32, %arg1: i32) -> (i32, i32) {
    %c0_i32 = arith.constant 0 : i32
    %c0_i32_0 = arith.constant 0 : i32
    return %arg0, %c0_i32 : i32, i32
  }
  func.func @transform_1(%arg0: i32, %arg1: i32) -> (i32, i32) {
    %c0_i32 = arith.constant 0 : i32
    %c0_i32_0 = arith.constant 0 : i32
    return %c0_i32, %arg1 : i32, i32
  }
  func.func @transform_2(%arg0: i32, %arg1: i32) -> (i32, i32) {
    %c0_i32 = arith.constant 0 : i32
    %c0_i32_0 = arith.constant 0 : i32
    return %c0_i32, %arg1 : i32, i32
  }
  func.func @transform_3(%arg0: i32, %arg1: i32) -> (i32, i32) {
    %c0_i32 = arith.constant 0 : i32
    %c0_i32_0 = arith.constant 0 : i32
    return %arg1, %c0_i32 : i32, i32
  }
  func.func @transform_4(%arg0: i32, %arg1: i32) -> (i32, i32) {
    %c0_i32 = arith.constant 0 : i32
    %c0_i32_0 = arith.constant 0 : i32
    %c0_i32_1 = arith.constant 0 : i32
    return %c0_i32, %c0_i32_0 : i32, i32
  }
  func.func @transform_5(%arg0: i32, %arg1: i32) -> (i32, i32) {
    %c0_i32 = arith.constant 0 : i32
    %c0_i32_0 = arith.constant 0 : i32
    return %arg0, %c0_i32 : i32, i32
  }
  func.func @transform_6(%arg0: i32, %arg1: i32) -> (i32, i32) {
    %c0_i32 = arith.constant 0 : i32
    return %arg0, %arg1 : i32, i32
  }
}

</mosaic_0001>

<bundles_post_ra>
// kernel: tpu_custom_call.1
= control target key start
LH: loop header
LB: loop body
LE: loop exit
PB: predicated region body
PF: predicated region fallthrough
CT: control target
= control target key end

     0   :  { %s1959_s0 = inlined_call_operand.hbm [shape: f32[16,128], index: 0, kind: input, shape index: {}]   ;;  %s1960_s1 = inlined_call_operand.hbm [shape: f32[128,256], index: 1, kind: input, shape index: {}]   ;;  %s1961_s2 = inlined_call_operand.vmem [shape: f32[1,256], index: 2, kind: input, shape index: {}]   ;;  %s1962_s3 = inlined_call_operand.hbm [shape: f32[256,128], index: 3, kind: input, shape index: {}]   ;;  %s1963_s4 = inlined_call_operand.vmem [shape: f32[1,128], index: 4, kind: input, shape index: {}]   ;;  %s1964_s5 = inlined_call_operand.hbm [shape: f32[16,128], index: 5, kind: output, shape index: {0}]   ;;  %s1965_s6 = inlined_call_operand.hbm [shape: f32[16,256], index: 6, kind: output, shape index: {1}]  }
   0x1   :  { %1986 = sst [smem:[#allocation28_spill]] %s1960_s1 }
   0x2   :  { %1987 = sst [smem:[#allocation29_spill]] %s1961_s2 }
   0x3   :  { %1988 = sst [smem:[#allocation30_spill]] %s1963_s4 }
   0x4   :  { %1989 = sst [smem:[#allocation31_spill]] %s1964_s5 }
   0x5   :  { %1990 = sst [smem:[#allocation32_spill]] %s1965_s6 }
   0x6   :  { %12 = vsyncpa [#allocation4], 0 }
   0x7   :  { %14 = vsyncpa [#allocation4 + $0x1], 0 }
   0x8   :  { %15 = vsyncpa [#allocation7], 0 }
   0x9   :  { %17 = vsyncpa [#allocation7 + $0x1], 0 }
   0xa   :  { %18 = vsyncpa [#allocation5], 0 }
   0xb   :  { %20 = vsyncpa [#allocation5 + $0x1], 0 }
   0xc   :  { %21 = vsyncpa [#allocation11], 0 }
   0xd   :  { %23 = vsyncpa [#allocation11 + $0x1], 0  ;;  %s1449_s21 = smov 0   ;;  %s1451_s22 = smov 0  }
   0xe   :  { %s1453_s23 = smov 0   ;;  %s1455_s24 = smov 0  }
   0xf   :  { %s1457_s25 = smov 0   ;;  %s1459_s26 = smov 0  }
  0x10   :  { %s1461_s27 = smov 0   ;;  %s1463_s28 = smov 0  }
  0x11   :  { %s1465_s29 = smov 0   ;;  %s1467_s30 = smov 0  }
  0x12   :  { %s1469_s7 = smov 0   ;;  %s1471_s8 = smov 0  }
  0x13   :  { %s1473_s9 = smov 0   ;;  %s1475_s10 = smov 0  }
  0x14 LB: > { %1991 = sst [smem:[#allocation16_spill]] %s1356_s23  ;;  %p1969_p0 = scmp.eq.s32.totalorder %s1400_s10, 0  ;;  %s1400_s10 = sphi %s1475_s10, %s29_s10   ;;  %s1396_s9 = sphi %s1473_s9, %s2049_s9   ;;  %s1392_s8 = sphi %s1471_s8, %s2056_s8   ;;  %s1388_s7 = sphi %s1469_s7, %s2047_s7   ;;  %s1384_s30 = sphi %s1467_s30, %s2055_s30   ;;  %s1380_s29 = sphi %s1465_s29, %s2046_s29   ;;  %s1376_s28 = sphi %s1463_s28, %s2054_s28   ;;  %s1372_s27 = sphi %s1461_s27, %s2053_s27   ;;  %s1368_s26 = sphi %s1459_s26, %s2044_s26   ;;  %s1364_s25 = sphi %s1457_s25, %s2052_s25   ;;  %s1360_s24 = sphi %s1455_s24, %s2042_s24   ;;  %s1356_s23 = sphi %s1453_s23, %s2041_s23   ;;  %s1352_s22 = sphi %s1451_s22, %s2051_s22   ;;  %s1348_s21 = sphi %s1449_s21, %s2050_s21  }
  0x15   : > { %1992 = sst [smem:[#allocation17_spill]] %s1364_s25  ;;  %p81_p1 = scmp.ne.s32.totalorder %s1368_s26, %s1364_s25 }
  0x16   : > { %1993 = sst [smem:[#allocation18_spill]] %s1368_s26  ;;  %p1968_p2 = scmp.lt.s32.totalorder %s1400_s10, 4 }
  0x17   : > { %1994 = sst [smem:[#allocation19_spill]] %s1380_s29  ;;  %p83_p3 = por %p81_p1, %p1969_p0 }
  0x18   : > { %1995 = sst [smem:[#allocation20_spill]] %s1384_s30  ;;  %s259_s11 = sand.u32 1, %s1400_s10  }
  0x19   : > { %1996 = sst [smem:[#allocation21_spill]] %s1388_s7  ;;  %s261_s12 = sand.u32 1, %s1368_s26  }
  0x1a   : > { %1997 = sst [smem:[#allocation22_spill]] %s1396_s9  ;;  %s1527_s13 = sshll.u32 %s261_s12, 7 }
  0x1b   : > { %s805_s14 = sshll.u32 %s1392_s8, 7  ;;  %s1998_s1 = sld [smem:[#allocation28_spill]] }
  0x1c   : > { %s263_s18 = scalar_lea.vmem [#allocation6], %s1527_s13  ;;  %p1538_p4 = pnand %p1968_p2, %p83_p3 }
  0x1d   : > { %s269_s19 = sshll.u32 %s263_s18, 4  ;;  %p809_p5 = scmp.ge.s32.totalorder %s1400_s10, 1  ;;  %s1542_s19 = int_to_ptr.vmem [resolvable:$true] %s269_s19 }
  0x1e   : > { %s1545_s12 = scalar_lea.sflag [#allocation7], %s259_s11  ;;  %p1975_p7 = pneg %p1538_p4 }
  0x21   : > { %s1533_s17 = scalar_lea.hbm %s1998_s1, %s805_s14  ;;  %s1133_s18 = scalar_lea.hbm %s1998_s1, 4096 }
  0x22   : > { %s1128_s14 = scalar_lea.hbm %s1533_s17, 2048  ;;  %p1134_p10 = scmp.lt.u32.totalorder %s1533_s17, %s1998_s1 }
  0x23   : > { %p1129_p6 = scmp.ne.s32.totalorder %s1533_s17, %s1128_s14  ;;  %p1135_p11 = scmp.lt.u32.totalorder %s1133_s18, %s1128_s14 }
  0x24   : > { %p1137_p13 = scmp.lt.u32.totalorder %s1128_s14, %s1533_s17 }
  0x25   : > { %p1131_p8 = pnand %p1975_p7, %p1129_p6  ;;  %p1136_p12 = por %p1135_p11, %p1134_p10 }
  0x27   : > { %p1132_p9 = pneg %p1131_p8  ;;  %p1138_p1 = por %p1137_p13, %p1136_p12 }
  0x29   : > { %p1139_p3 = pnand %p1138_p1, %p1132_p9 }
  0x2b   : > { %1142 = shalt.err (!%p1139_p3)
}
  0x2c   : > { %s1143_s11 = scalar_lea.vmem %s1542_s19, 2048  ;;  %s1402_s15 = smov [#allocation6]  }
  0x2d   : > { %p1144_p6 = scmp.ne.s32.totalorder %s1542_s19, %s1143_s11  ;;  %s1148_s16 = sshll.u32 %s1402_s15, 4  ;;  %s1149_s16 = int_to_ptr.vmem [resolvable:$false] %s1148_s16 }
  0x2e   : > { %s1150_s5 = scalar_lea.vmem %s1149_s16, 4096  ;;  %p1151_p0 = scmp.lt.s32.totalorder %s1542_s19, %s1149_s16 }
  0x2f   : > { %p1146_p8 = pnand %p1144_p6, %p1975_p7  ;;  %p1152_p10 = scmp.lt.s32.totalorder %s1150_s5, %s1143_s11 }
  0x31   : > { %p1147_p2 = pneg %p1146_p8  ;;  %p1153_p11 = por %p1152_p10, %p1151_p0 }
  0x33   : > { %p1154_p12 = pnand %p1153_p11, %p1147_p2 }
  0x35   : > { %1157 = shalt.err (!%p1154_p12)
}
  0x36   : > { %s1403_s6 = smov 256   ;;  %s1970_s14 = smov 128  }
  0x37   : > { %s1971_s18 = smov 8   ;;  %p304_p0 = scmp.lt.s32.totalorder %s1400_s10, 5 }
  0x38   : > { %996 = dma.hbm_to_vmem [thread:$0]  (!%p1538_p4), %s1533_s17, 2048, %s1542_s19, %s1545_s12, %s1403_s6, %s1970_s14, %s1971_s18  }
  0x39   : > { %p1578_p2 = pnand %p809_p5, %p304_p0  ;;  %s1583_s15 = sadd.s32 4294967295, %s1400_s10  }
  0x3a   : > { %s799_s16 = sadd.s32 4294967294, %s1400_s10   ;;  %s38_s5 = sadd.s32 1, %s1392_s8 }
  0x3b   : > { %s2000_s11 = scalar_select %p1578_p2, 1, 0 }
  0x3c   : > { %s41_s1 = sadd.s32 1, %s1396_s9  ;;  %p39_p9 = scmp.ge.s32.totalorder %s38_s5, 2 }
  0x3d   : > { %s48_s17 = sadd.s32 1, %s1380_s29  ;;  %p55_p13 = scmp.ne.s32.totalorder %s1380_s29, %s1376_s28 }
  0x3e   : > { %p61_p1 = scmp.ne.s32.totalorder %s1376_s28, %s1372_s27  ;;  %s2058_s5 = smov (%p39_p9, %s38_s5), 0 }
  0x3f   : > { %2001 = sst [smem:[#allocation23_spill]] %s2058_s5  ;;  %s2060_s1 = smov (!%p39_p9, %s41_s1), %s1396_s9 }
  0x40   : > { %p2002_p5 = scmp.eq.s32.totalorder %s1400_s10, 0  ;;  %p62_p6 = scmp.eq.s32.totalorder %s1583_s15, 0 }
  0x41   : > { %p43_p8 = scmp.ge.s32.totalorder %s2060_s1, 2  ;;  %s71_s6 = ssub.s32 %s1392_s8, %s2058_s5 }
  0x42   : > { %p1601_p3 = por %p2002_p5, %p55_p13  ;;  %p1611_p10 = por %p62_p6, %p61_p1 }
  0x43   : > { %p72_p11 = scmp.eq.s32.totalorder %s71_s6, 0  ;;  %s2062_s1 = smov (%p43_p8, %s2060_s1), 0 }
  0x44   : > { %s2004_s14 = scalar_select %p1611_p10, 1, 0 }
  0x45   : > { %2005 = sst [smem:[#allocation24_spill]] %s2062_s1  ;;  %s74_s18 = sadd.s32 1, %s1368_s26 }
  0x46   : > { %p87_p12 = scmp.ne.s32.totalorder %s1364_s25, %s1360_s24  ;;  %s45_s5 = ssub.s32 %s1396_s9, %s2062_s1 }
  0x47   : > { %p184_p0 = scmp.eq.s32.totalorder %s1583_s15, 3  ;;  %p46_p9 = scmp.eq.s32.totalorder %s45_s5, 0 }
  0x48   : > { %p1623_p5 = por %p87_p12, %p62_p6  ;;  %p190_p7 = scmp.eq.s32.totalorder %s799_s16, 3 }
  0x49   : > { %s1628_s4 = scalar_select %p72_p11, %s1368_s26, %s74_s18  }
  0x4a   : > { %s2006_s7 = scalar_select %p1623_p5, 1, 0 }
  0x4b   : > { %2007 = sst [smem:[#allocation25_spill]] %s1628_s4  ;;  %p1638_p8 = por %p184_p0, %p55_p13 }
  0x4c   : > { %s1631_s2 = scalar_select %p46_p9, %s1380_s29, %s48_s17  }
  0x4d   : > { %s2009_s30 = scalar_select %p1638_p8, 1, 0 }
  0x4e   : > { %2008 = sst [smem:[#allocation26_spill]] %s1631_s2  ;;  %s198_s24 = sor.u32 %s71_s6, %s45_s5 }
  0x4f   : > { %s201_s1 = sadd.s32 1, %s1356_s23  ;;  %p1646_p6 = por %p190_p7, %p61_p1 }
  0x50   : > { %p199_p11 = scmp.eq.s32.totalorder %s198_s24, 0  ;;  %p211_p12 = scmp.ne.s32.totalorder %s1356_s23, %s1352_s22 }
  0x51   : > { %s2010_s25 = scalar_select %p1646_p6, 1, 0 }
  0x52   : > { %p217_p9 = scmp.ne.s32.totalorder %s1352_s22, %s1348_s21  ;;  %p1659_p13 = por %p211_p12, %p184_p0 }
  0x53   : > { %s1655_s18 = scalar_select %p199_p11, %s1356_s23, %s201_s1  }
  0x54   : > { %s2012_s17 = scalar_select %p1659_p13, 1, 0 }
  0x55   : > { %2011 = sst [smem:[#allocation27_spill]] %s1655_s18  ;;  %p1663_p8 = por %p217_p9, %p190_p7 }
  0x56   : > { %s241_s5 = sand.u32 1, %s1380_s29   ;;  %s803_s6 = sshll.u32 %s1396_s9, 7 }
  0x57   : > { %s2013_s16 = scalar_select %p1663_p8, 1, 0 }
  0x58   : > { %s802_s2 = sshll.u32 %s241_s5, 3  ;;  %s1672_s24 = scalar_lea.hbm %s1959_s0, %s803_s6 }
  0x59   : > { %s245_s1 = scalar_lea.vmem [#allocation3], %s802_s2  ;;  %p2014_p1 = scmp.lt.s32.totalorder %s1400_s10, 4 }
  0x5a   : > { %s252_s18 = sshll.u32 %s245_s1, 4  ;;  %s827_s9 = sshll.u32 %s1392_s8, 11  ;;  %s1682_s18 = int_to_ptr.vmem [resolvable:$true] %s252_s18 }
  0x5b   : > { %p1678_p7 = pnand %p2014_p1, %p1601_p3  ;;  %s242_s4 = scalar_lea.sflag [#allocation4], %s241_s5 }
  0x5c   : > { %s1158_s26 = scalar_lea.hbm %s1672_s24, 128  ;;  %s1163_s6 = scalar_lea.hbm %s1959_s0, 256 }
  0x5d   : > { %p1159_p0 = scmp.ne.s32.totalorder %s1672_s24, %s1158_s26  ;;  %p1160_p11 = pneg %p1678_p7 }
  0x5e   : > { %p1164_p3 = scmp.lt.u32.totalorder %s1672_s24, %s1959_s0  ;;  %p1165_p1 = scmp.lt.u32.totalorder %s1163_s6, %s1158_s26 }
  0x5f   : > { %p1161_p12 = pnand %p1160_p11, %p1159_p0  ;;  %p1167_p6 = scmp.lt.u32.totalorder %s1158_s26, %s1672_s24 }
  0x60   : > { %p1166_p8 = por %p1165_p1, %p1164_p3 }
  0x61   : > { %p1162_p9 = pneg %p1161_p12 }
  0x62   : > { %p1168_p13 = por %p1167_p6, %p1166_p8 }
  0x64   : > { %p1169_p5 = pnand %p1168_p13, %p1162_p9 }
  0x66   : > { %1172 = shalt.err (!%p1169_p5)
}
  0x67   : > { %s1173_s5 = scalar_lea.vmem %s1682_s18, 128  ;;  %s1406_s2 = smov [#allocation3]  }
  0x68   : > { %p1174_p0 = scmp.ne.s32.totalorder %s1682_s18, %s1173_s5  ;;  %s1178_s19 = sshll.u32 %s1406_s2, 4  ;;  %s1179_s19 = int_to_ptr.vmem [resolvable:$false] %s1178_s19 }
  0x69   : > { %s1180_s29 = scalar_lea.vmem %s1179_s19, 256  ;;  %p1181_p2 = scmp.lt.s32.totalorder %s1682_s18, %s1179_s19 }
  0x6a   : > { %p1176_p12 = pnand %p1174_p0, %p1160_p11  ;;  %p1182_p3 = scmp.lt.s32.totalorder %s1180_s29, %s1173_s5 }
  0x6c   : > { %p1177_p10 = pneg %p1176_p12  ;;  %p1183_p1 = por %p1182_p3, %p1181_p2 }
  0x6e   : > { %p1184_p8 = pnand %p1183_p1, %p1177_p10 }
  0x70   : > { %1187 = shalt.err (!%p1184_p8)
}
  0x71   : > { %993 = dma.hbm_to_vmem [thread:$0]  (!%p1678_p7), %s1672_s24, 128, %s1682_s18, %s242_s4  }
  0x72   : > { %s1715_s1 = scalar_lea.hbm %s1962_s3, %s827_s9  ;;  %s289_s5 = scalar_lea.vmem [#allocation8], %s1527_s13 }
  0x73   : > { %s296_s2 = sshll.u32 %s289_s5, 4  ;;  %s1188_s23 = scalar_lea.hbm %s1715_s1, 2048  ;;  %s1718_s2 = int_to_ptr.vmem [resolvable:$true] %s296_s2 }
  0x74   : > { %p1189_p2 = scmp.ne.s32.totalorder %s1715_s1, %s1188_s23  ;;  %p2016_p10 = pneg %p1538_p4 }
  0x75   : > { %s1193_s4 = scalar_lea.hbm %s1962_s3, 4096  ;;  %p1194_p13 = scmp.lt.u32.totalorder %s1715_s1, %s1962_s3 }
  0x76   : > { %p1191_p5 = pnand %p1189_p2, %p2016_p10  ;;  %p1195_p7 = scmp.lt.u32.totalorder %s1193_s4, %s1188_s23 }
  0x77   : > { %p1197_p9 = scmp.lt.u32.totalorder %s1188_s23, %s1715_s1 }
  0x78   : > { %p1192_p6 = pneg %p1191_p5  ;;  %p1196_p11 = por %p1195_p7, %p1194_p13 }
  0x7a   : > { %p1198_p0 = por %p1197_p9, %p1196_p11 }
  0x7c   : > { %p1199_p12 = pnand %p1198_p0, %p1192_p6 }
  0x7e   : > { %1202 = shalt.err (!%p1199_p12)
}
  0x7f   : > { %s1203_s13 = scalar_lea.vmem %s1718_s2, 2048  ;;  %p2017_p1 = pmov %p2016_p10 }
  0x80   : > { %p1204_p3 = scmp.ne.s32.totalorder %s1718_s2, %s1203_s13  ;;  %s1407_s29 = smov [#allocation8]  }
  0x81   : > { %s1208_s26 = sshll.u32 %s1407_s29, 4  ;;  %s1209_s26 = int_to_ptr.vmem [resolvable:$false] %s1208_s26 }
  0x82   : > { %p1206_p8 = pnand %p1204_p3, %p2017_p1  ;;  %s1210_s6 = scalar_lea.vmem %s1209_s26, 4096 }
  0x83   : > { %p1211_p10 = scmp.lt.s32.totalorder %s1718_s2, %s1209_s26  ;;  %p1212_p5 = scmp.lt.s32.totalorder %s1210_s6, %s1203_s13 }
  0x84   : > { %p1207_p2 = pneg %p1206_p8 }
  0x85   : > { %p1213_p13 = por %p1212_p5, %p1211_p10 }
  0x87   : > { %p1214_p7 = pnand %p1213_p13, %p1207_p2 }
  0x89   : > { %1217 = shalt.err (!%p1214_p7)
}
  0x8a   : > { %s2018_s5 = smov 8   ;;  %s2019_s23 = smov 128  }
  0x8b   : > { %999 = dma.hbm_to_vmem [thread:$0]  (!%p1538_p4), %s1715_s1, 2048, %s1718_s2, %s1545_s12, %s2019_s23, %s2019_s23, %s2018_s5  }
  0x8c   : > { %p2020_p6 = scmp.ne.s32.totalorder %s2000_s11, 0 }
  0x8d   : > { %s1750_s18 = sand.u32 (!%p2020_p6), 1, %s1376_s28   ;;  %p2021_p11 = scmp.ne.s32.totalorder (!%p2020_p6), %s2004_s14, 0 }
  0x8e   : > { %308 = sbr.rel (%p2020_p6) target bundleno = 707 (0x2c3), region = 40  ;;  %s810_s24 = sshll.u32 (!%p2020_p6), %s1750_s18, 3 }
  0x8f   : > { %s311_s4 = scalar_lea.sflag (!%p2020_p6), [#allocation4], %s1750_s18  ;;  %s314_s9 = scalar_lea.vmem (!%p2020_p6), [#allocation3], %s810_s24 }
  0x95   : > { %1331 = dma.done.wait (%p2021_p11), %s311_s4, 128  }
  0x96   : > { %1333 = vsyncadd (%p2021_p11), %s311_s4, 4294967168  ;;  %s2022_s20 = sld [smem:[#allocation17_spill]]  ;;  %s319_s12 = sand.u32 1, %s1583_s15  }
  0x97   : > { %s320_s2 = scalar_lea.sflag [#allocation7], %s319_s12  ;;  %p2023_p4 = scmp.ne.s32.totalorder %s2006_s7, 0 }
  0x9c   : > { %s321_s11 = sand.u32 1, %s2022_s20  }
  0x9d   : > { %s811_s1 = sshll.u32 %s321_s11, 7 }
  0x9e   : > { %s1760_s19 = scalar_lea.vmem [#allocation6], %s811_s1 }
  0x9f   : > { %1335 = dma.done.wait (%p2023_p4), %s320_s2, 4096  }
  0xa0   : > { %1337 = vsyncadd (%p2023_p4), %s320_s2, 4294963200  ;;  %s2024_s13 = sld [smem:[#allocation20_spill]]  ;;  %s376_s14 = sand.u32 1, %s1352_s22  }
  0xa1   : > { %s1770_s29 = sshll.u32 %s376_s14, 3  ;;  %s2025_s5 = sld [smem:[#allocation29_spill]] }
  0xa2   : > { %s1779_s4 = scalar_lea.vmem [#allocation8], %s811_s1  ;;  %s1781_s7 = scalar_lea.vmem [#allocation9], %s810_s24 }
  0xa3   : > { %s378_s20 = scalar_lea.vmem [#allocation10], %s1770_s29 }
  0xa6   : > { %p379_p9 = scmp.lt.s32.totalorder %s2024_s13, 1  ;;  %p815_p0 = scmp.ne.s32.totalorder %s2024_s13, 0 }
  0xa7   : > { %v387_v0 = vld [vmem:[%s314_s9] sm:$0xff] (!%p815_p0)  ;;  %s2026_s2 = sld [smem:[#allocation30_spill]] (!%p815_p0)  ;;  %v1408_v3 = vmov (!%p815_p0), 0.0  }
  0xa8   : > { %s1773_s15 = scalar_select %p379_p9, %s2024_s13, 1 }
  0xa9   : > { %386 = sbr.rel (%p815_p0) target bundleno = 177 (0xb1), region = 56  ;;  %397 = vst [vmem:[%s1781_s7] sm:$0xff] (!%p815_p0), %v1408_v3 }
  0xaa   : > { %s381_s23 = scalar_lea.vmem %s2025_s5, %s1773_s15 }
  0xad   : > { %v816_v1 = vld [vmem:[%s2026_s2] ss:$0 sm:$0xff] (!%p815_p0) }
  0xae   : > { %v395_v2 = vsub.f32 (!%p815_p0), %v387_v0, %v816_v1 }
  0xb0   : > { %396 = vst [vmem:[#allocation2] sm:$0xff] %v395_v2 }
  0xb1 PF: > { %v399_v4 = vld [vmem:[%s1760_s19] sm:$0xff]  ;;  %v400_v5 = vld [vmem:[%s1760_s19 + $0x8] sm:$0xff]  ;;  %v401_v6 = vld [vmem:[%s1760_s19 + $0x10] sm:$0xff]  ;;  %v1409_v7 = vmov 0.0|0.0   ;;  %vm1410_vm0 = vmmov 0   ;;  %v1411_v10 = vmov 0.0  }
  0xb2   : > { %932 = vmatprep.subr.bf16.mxu0 %v1409_v7  ;;  %v933_v8 = vpack.c.bf16 %v400_v5, %v399_v4  ;;  %v402_v9 = vld [vmem:[%s1760_s19 + $0x18] sm:$0xff]  ;;  %894 = vmatprep.mubr.msk.f32.mxu0 %vm1410_vm0, %v1411_v10  ;;  %v403_v12 = vld [vmem:[%s1760_s19 + $0x20] sm:$0xff]  ;;  %v404_v13 = vld [vmem:[%s1760_s19 + $0x28] sm:$0xff] }
  0xb3   : > { %956 = vmatprep.subr.bf16.mxu1 %v1409_v7  ;;  %929 = vmatprep.mubr.msk.f32.mxu1 %vm1410_vm0, %v1411_v10  ;;  %v936_v11 = vpack.c.bf16 %v402_v9, %v401_v6  ;;  %v495_v14 = vld [vmem:[%s1779_s4] sm:$0xff]  ;;  %v496_v15 = vld [vmem:[%s1779_s4 + $0x8] sm:$0xff]  ;;  %v497_v16 = vld [vmem:[%s1779_s4 + $0x10] sm:$0xff]  ;;  %v939_v18 = vpack.c.bf16 %v404_v13, %v403_v12 }
  0xb4   : > { %934 = vmatpush3.bf16.msra.mxu0 %v933_v8  ;;  %v498_v17 = vld [vmem:[%s1779_s4 + $0x18] sm:$0xff]  ;;  %v957_v19 = vpack.c.bf16 %v496_v15, %v495_v14  ;;  %v405_v20 = vld [vmem:[%s1760_s19 + $0x30] sm:$0xff]  ;;  %v499_v23 = vld [vmem:[%s1779_s4 + $0x20] sm:$0xff] }
  0xb5   : > { %935 = vmatprep.subr.bf16.mxu0 %v1409_v7  ;;  %v406_v21 = vld [vmem:[%s1760_s19 + $0x38] sm:$0xff]  ;;  %v960_v22 = vpack.c.bf16 %v498_v17, %v497_v16  ;;  %v500_v24 = vld [vmem:[%s1779_s4 + $0x28] sm:$0xff]  ;;  %v407_v26 = vld [vmem:[%s1760_s19 + $0x40] sm:$0xff] }
  0xb6   : > { %958 = vmatpush3.bf16.msra.mxu1 %v957_v19  ;;  %v942_v25 = vpack.c.bf16 %v406_v21, %v405_v20  ;;  %v408_v27 = vld [vmem:[%s1760_s19 + $0x48] sm:$0xff]  ;;  %v963_v28 = vpack.c.bf16 %v500_v24, %v499_v23  ;;  %v501_v29 = vld [vmem:[%s1779_s4 + $0x30] sm:$0xff]  ;;  %v502_v30 = vld [vmem:[%s1779_s4 + $0x38] sm:$0xff] }
  0xb7   : > { %959 = vmatprep.subr.bf16.mxu1 %v1409_v7  ;;  %v945_v31 = vpack.c.bf16 %v408_v27, %v407_v26  ;;  %v409_v32 = vld [vmem:[%s1760_s19 + $0x50] sm:$0xff]  ;;  %v410_v33 = vld [vmem:[%s1760_s19 + $0x58] sm:$0xff]  ;;  %v966_v34 = vpack.c.bf16 %v502_v30, %v501_v29  ;;  %v503_v35 = vld [vmem:[%s1779_s4 + $0x40] sm:$0xff] }
  0xb8   : > { %937 = vmatpush3.bf16.msra.mxu0 %v936_v11  ;;  %v504_v36 = vld [vmem:[%s1779_s4 + $0x48] sm:$0xff]  ;;  %v948_v37 = vpack.c.bf16 %v410_v33, %v409_v32  ;;  %v411_v38 = vld [vmem:[%s1760_s19 + $0x60] sm:$0xff]  ;;  %v505_v41 = vld [vmem:[%s1779_s4 + $0x50] sm:$0xff] }
  0xb9   : > { %938 = vmatprep.subr.bf16.mxu0 %v1409_v7  ;;  %v412_v39 = vld [vmem:[%s1760_s19 + $0x68] sm:$0xff]  ;;  %v969_v40 = vpack.c.bf16 %v504_v36, %v503_v35  ;;  %v506_v42 = vld [vmem:[%s1779_s4 + $0x58] sm:$0xff]  ;;  %v413_v44 = vld [vmem:[%s1760_s19 + $0x70] sm:$0xff] }
  0xba   : > { %961 = vmatpush3.bf16.msra.mxu1 %v960_v22  ;;  %v951_v43 = vpack.c.bf16 %v412_v39, %v411_v38  ;;  %v414_v45 = vld [vmem:[%s1760_s19 + $0x78] sm:$0xff]  ;;  %v972_v46 = vpack.c.bf16 %v506_v42, %v505_v41  ;;  %v507_v47 = vld [vmem:[%s1779_s4 + $0x60] sm:$0xff]  ;;  %v508_v48 = vld [vmem:[%s1779_s4 + $0x68] sm:$0xff]  ;;  %s2028_s19 = sld [smem:[#allocation20_spill]] }
  0xbb   : > { %962 = vmatprep.subr.bf16.mxu1 %v1409_v7  ;;  %v954_v49 = vpack.c.bf16 %v414_v45, %v413_v44  ;;  %v975_v50 = vpack.c.bf16 %v508_v48, %v507_v47  ;;  %v398_v51 = vld [vmem:[#allocation2] sm:$0xff]  ;;  %v509_v52 = vld [vmem:[%s1779_s4 + $0x70] sm:$0xff]  ;;  %v510_v53 = vld [vmem:[%s1779_s4 + $0x78] sm:$0xff] }
  0xbc   : > { %940 = vmatpush3.bf16.msra.mxu0 %v939_v18  ;;  %v978_v54 = vpack.c.bf16 %v510_v53, %v509_v52  ;;  %v817_v55 = vld [vmem:[%s381_s23] ss:$0 sm:$0xff] }
  0xbd   : > { %941 = vmatprep.subr.bf16.mxu0 %v1409_v7  ;;  %v494_v60 = vld [vmem:[%s1781_s7] sm:$0xff] }
  0xbe   : > { %964 = vmatpush3.bf16.msra.mxu1 %v963_v28 }
  0xbf   : > { %965 = vmatprep.subr.bf16.mxu1 %v1409_v7 }
  0xc0   : > { %943 = vmatpush3.bf16.msra.mxu0 %v942_v25  ;;  %p818_p12 = scmp.ne.s32.totalorder %s2028_s19, 1 }
  0xc1   : > { %944 = vmatprep.subr.bf16.mxu0 %v1409_v7  ;;  %s2029_s26 = sld [smem:[#allocation30_spill]] (!%p818_p12) }
  0xc2   : > { %967 = vmatpush3.bf16.msra.mxu1 %v966_v34 }
  0xc3   : > { %968 = vmatprep.subr.bf16.mxu1 %v1409_v7 }
  0xc4   : > { %946 = vmatpush3.bf16.msra.mxu0 %v945_v31 }
  0xc5   : > { %947 = vmatprep.subr.bf16.mxu0 %v1409_v7 }
  0xc6   : > { %970 = vmatpush3.bf16.msra.mxu1 %v969_v40 }
  0xc7   : > { %971 = vmatprep.subr.bf16.mxu1 %v1409_v7  ;;  %v819_v1 = vld [vmem:[%s2029_s26] ss:$0 sm:$0xff] (!%p818_p12) }
  0xc8   : > { %949 = vmatpush3.bf16.msra.mxu0 %v948_v37 }
  0xc9   : > { %950 = vmatprep.subr.bf16.mxu0 %v1409_v7 }
  0xca   : > { %973 = vmatpush3.bf16.msra.mxu1 %v972_v46 }
  0xcb   : > { %974 = vmatprep.subr.bf16.mxu1 %v1409_v7 }
  0xcc   : > { %952 = vmatpush3.bf16.msra.mxu0 %v951_v43 }
  0xcd   : > { %953 = vmatprep.subr.bf16.mxu0 %v1409_v7 }
  0xce   : > { %976 = vmatpush3.bf16.msra.mxu1 %v975_v50 }
  0xcf   : > { %977 = vmatprep.subr.bf16.mxu1 %v1409_v7 }
  0xd0   : > { %955 = vmatpush3.bf16.msra.mxu0 %v954_v49 }
  0xd2   : > { %979 = vmatpush3.bf16.msra.mxu1 %v978_v54 }
  0xd3   : > { %895 = vmatmul.mubr.f32.vlgmr.msra.gmra.mrb[0].mxu0 %v398_v51 }
 0x1a6   : > { %v488_v56 = vpop.f32.mrb[0].mxu0 }
 0x1a7   : > { %v489_v57 = vadd.f32 %v817_v55, %v488_v56  ;;  %v896_v58 = vpop.f32.mrb[1].mxu0 }
 0x1a9   : > { %v492_v59 = vmax.f32 %v489_v57, 0.0 }
 0x1ab   : > { %493 = vst [vmem:[%s378_s20] sm:$0xff] %v492_v59  ;;  %930 = vmatmul.mubr.f32.vlgmr.msra.gmra.mrb[0].mxu1 %v492_v59 }
 0x27b   : > { %586 = sbr.rel (%p818_p12) target bundleno = 652 (0x28c), region = 60 }
 0x27e   : > { %v577_v61 = vpop.f32.mrb[0].mxu1 }
 0x27f   : > { %v581_v62 = vadd.f32 %v577_v61, %v494_v60  ;;  %v931_v63 = vpop.f32.mrb[1].mxu1 }
 0x281   : > { %582 = vst [vmem:[%s1781_s7] sm:$0xff] %v581_v62 }
 0x288   : > { %v587_v0 = vld [vmem:[%s1781_s7] sm:$0xff] }
 0x289   : > { %v595_v2 = vadd.f32 %v819_v1, %v587_v0 }
 0x28b   : > { %596 = vst [vmem:[%s1781_s7] sm:$0xff] %v595_v2 }
 0x28c PF: > { %s2030_s6 = sld [smem:[#allocation21_spill]]  ;;  %s2031_s12 = sld [smem:[#allocation31_spill]] }
 0x28d   : > { %s616_s2 = sshll.u32 %s1781_s7, 4  ;;  %s598_s24 = scalar_lea.sflag [#allocation5], %s1750_s18  ;;  %s617_s2 = int_to_ptr.vmem [resolvable:$true] %s616_s2 }
 0x28e   : > { %s1218_s9 = scalar_lea.vmem %s617_s2, 128  ;;  %p2032_p1 = scmp.ne.s32.totalorder %s2009_s30, 0 }
 0x28f   : > { %p1219_p3 = scmp.ne.s32.totalorder %s617_s2, %s1218_s9  ;;  %s1412_s1 = smov [#allocation9]  }
 0x290   : > { %s1222_s19 = sshll.u32 %s1412_s1, 4  ;;  %s1223_s19 = int_to_ptr.vmem [resolvable:$false] %s1222_s19 }
 0x291   : > { %p1220_p8 = pnand %p1219_p3, %p2032_p1  ;;  %s1224_s13 = scalar_lea.vmem %s1223_s19, 256 }
 0x292   : > { %s822_s5 = sshll.u32 %s2030_s6, 7  ;;  %p1225_p10 = scmp.lt.s32.totalorder %s617_s2, %s1223_s19 }
 0x293   : > { %s1856_s11 = scalar_lea.hbm %s2031_s12, %s822_s5  ;;  %p1221_p2 = pneg %p1220_p8 }
 0x294   : > { %p1226_p5 = scmp.lt.s32.totalorder %s1224_s13, %s1218_s9 }
 0x296   : > { %p1227_p13 = por %p1226_p5, %p1225_p10 }
 0x298   : > { %p1228_p7 = pnand %p1227_p13, %p1221_p2 }
 0x29a   : > { %1231 = shalt.err (!%p1228_p7)
}
 0x29b   : > { %s1232_s18 = scalar_lea.hbm %s1856_s11, 128  ;;  %s1236_s26 = scalar_lea.hbm %s2031_s12, 256 }
 0x29c   : > { %p1233_p6 = scmp.ne.s32.totalorder %s1856_s11, %s1232_s18  ;;  %p1237_p9 = scmp.lt.u32.totalorder %s1856_s11, %s2031_s12 }
 0x29d   : > { %p1238_p0 = scmp.lt.u32.totalorder %s1236_s26, %s1232_s18  ;;  %p1240_p3 = scmp.lt.u32.totalorder %s1232_s18, %s1856_s11 }
 0x29e   : > { %p1234_p11 = pnand %p1233_p6, %p2032_p1 }
 0x29f   : > { %p1239_p12 = por %p1238_p0, %p1237_p9 }
 0x2a0   : > { %p1235_p4 = pneg %p1234_p11 }
 0x2a1   : > { %p1241_p8 = por %p1240_p3, %p1239_p12 }
 0x2a3   : > { %p1242_p2 = pnand %p1241_p8, %p1235_p4 }
 0x2a5   : > { %1245 = shalt.err (!%p1242_p2)
}
 0x2a6   : > { %s2033_s4 = sld [smem:[#allocation20_spill]]  ;;  %s823_s9 = sshll.u32 %s2030_s6, 1 }
 0x2a7   : > { %986 = dma.vmem_to_hbm [thread:$0]  (%p2032_p1), %s617_s2, 128, %s1856_s11, %s598_s24  }
 0x2a8   : > { %s631_s1 = sshll.u32 %s378_s20, 4  ;;  %s2034_s30 = sld [smem:[#allocation32_spill]]  ;;  %s1881_s1 = int_to_ptr.vmem [resolvable:$true] %s631_s1 }
 0x2a9   : > { %s603_s5 = scalar_lea.sflag [#allocation11], %s376_s14  ;;  %s1246_s23 = scalar_lea.vmem %s1881_s1, 128 }
 0x2aa   : > { %p1247_p10 = scmp.ne.s32.totalorder %s1881_s1, %s1246_s23  ;;  %p2036_p5 = scmp.ne.s32.totalorder %s2012_s17, 0 }
 0x2ab   : > { %s1413_s29 = smov [#allocation10]  }
 0x2ac   : > { %s627_s19 = sadd.s32 %s2033_s4, %s823_s9  ;;  %p1248_p1 = pnand %p1247_p10, %p2036_p5 }
 0x2ad   : > { %s824_s13 = sshll.u32 %s627_s19, 7  ;;  %s1250_s20 = sshll.u32 %s1413_s29, 4  ;;  %s1251_s20 = int_to_ptr.vmem [resolvable:$false] %s1250_s20 }
 0x2ae   : > { %s2035_s15 = smov %s2034_s30  ;;  %s629_s26 = scalar_lea.hbm %s2034_s30, %s824_s13 }
 0x2af   : > { %p1249_p13 = pneg %p1248_p1  ;;  %s1252_s6 = scalar_lea.vmem %s1251_s20, 256 }
 0x2b0   : > { %p1253_p7 = scmp.lt.s32.totalorder %s1881_s1, %s1251_s20  ;;  %p1254_p6 = scmp.lt.s32.totalorder %s1252_s6, %s1246_s23 }
 0x2b2   : > { %p1255_p11 = por %p1254_p6, %p1253_p7 }
 0x2b4   : > { %p1256_p4 = pnand %p1255_p11, %p1249_p13 }
 0x2b6   : > { %1259 = shalt.err (!%p1256_p4)
}
 0x2b7   : > { %s1260_s11 = scalar_lea.hbm %s629_s26, 128  ;;  %s1264_s24 = scalar_lea.hbm %s2035_s15, 512 }
 0x2b8   : > { %p1261_p9 = scmp.ne.s32.totalorder %s629_s26, %s1260_s11  ;;  %p1265_p3 = scmp.lt.u32.totalorder %s629_s26, %s2035_s15 }
 0x2b9   : > { %p1266_p8 = scmp.lt.u32.totalorder %s1264_s24, %s1260_s11  ;;  %p1268_p10 = scmp.lt.u32.totalorder %s1260_s11, %s629_s26 }
 0x2ba   : > { %p1262_p0 = pnand %p1261_p9, %p2036_p5 }
 0x2bb   : > { %p1267_p2 = por %p1266_p8, %p1265_p3 }
 0x2bc   : > { %p1263_p12 = pneg %p1262_p0 }
 0x2bd   : > { %p1269_p1 = por %p1268_p10, %p1267_p2 }
 0x2bf   : > { %p1270_p13 = pnand %p1269_p1, %p1263_p12 }
 0x2c1   : > { %1273 = shalt.err (!%p1270_p13)
}
 0x2c2   : > { %987 = dma.vmem_to_hbm [thread:$0]  (%p2036_p5), %s1881_s1, 128, %s629_s26, %s603_s5  }
 0x2c3 PF: > { %p1008_p7 = scmp.ge.s32.totalorder %s1400_s10, 2  ;;  %s643_s19 = sand.u32 1, %s1372_s27  }
 0x2c4   : > { %p2037_p6 = scmp.ne.s32.totalorder %s2010_s25, 0  ;;  %s644_s13 = scalar_lea.sflag [#allocation5], %s643_s19 }
 0x2c6   : > { %p1001_p11 = pnand %p1008_p7, %p2037_p6 }
 0x2c8   : > { %1339 = dma.done.wait (!%p1001_p11), %s644_s13, 128  }
 0x2c9   : > { %1341 = vsyncadd (!%p1001_p11), %s644_s13, 4294967168  ;;  %s652_s18 = sand.u32 1, %s1348_s21   ;;  %p2038_p4 = scmp.ne.s32.totalorder %s2013_s16, 0 }
 0x2ca   : > { %s653_s7 = scalar_lea.sflag [#allocation11], %s652_s18 }
 0x2cb   : > { %p1004_p9 = pnand %p1008_p7, %p2038_p4 }
 0x2cd   : > { %1343 = dma.done.wait (!%p1004_p9), %s653_s7, 128  }
 0x2ce   : > { %1345 = vsyncadd (!%p1004_p9), %s653_s7, 4294967168  ;;  %s29_s10 = sadd.s32 1, %s1400_s10   ;;  %s2040_s25 = sld [smem:[#allocation16_spill]] }
 0x2cf   : > { %p1912_p5 = scmp.ge.s32.totalorder %s29_s10, 6   ;;  %s2041_s23 = sld [smem:[#allocation27_spill]] }
 0x2d0   : > { %s2042_s24 = sld [smem:[#allocation17_spill]]  ;;  %s2043_s27 = sld [smem:[#allocation18_spill]] }
 0x2d1   : > { %s2044_s26 = sld [smem:[#allocation25_spill]]  ;;  %s2045_s1 = sld [smem:[#allocation19_spill]] }
 0x2d2   : > { %s2046_s29 = sld [smem:[#allocation26_spill]]  ;;  %s2047_s7 = sld [smem:[#allocation22_spill]] }
 0x2d3   : > { %s2048_s16 = sld [smem:[#allocation23_spill]]  ;;  %s2049_s9 = sld [smem:[#allocation24_spill]] }
 0x2d4   : > { %s2050_s21 = smov %s1352_s22  ;;  %s2051_s22 = smov %s2040_s25 }
 0x2d5   : > { %s2055_s30 = smov %s1392_s8  ;;  %28 = sbr.rel (!%p1912_p5) target bundleno = 20 (0x14), region = 137 }
 0x2d6   : > { %s2052_s25 = smov %s2043_s27  ;;  %s2053_s27 = smov %s1376_s28 }
 0x2d7   : > { %s2054_s28 = smov %s2045_s1 }
 0x2d9   : > { %s2056_s8 = smov %s2048_s16 }
 0x2dc   :  { %658 = vsyncpa [#allocation4], 1 }
 0x2dd   :  { %660 = vsyncpa [#allocation4 + $0x1], 1 }
 0x2de   :  { %661 = vsyncpa [#allocation7], 1 }
 0x2df   :  { %663 = vsyncpa [#allocation7 + $0x1], 1 }
 0x2e0   :  { %664 = vsyncpa [#allocation5], 1 }
 0x2e1   :  { %666 = vsyncpa [#allocation5 + $0x1], 1 }
 0x2e2   :  { %667 = vsyncpa [#allocation11], 1 }
 0x2e3   :  { %669 = vsyncpa [#allocation11 + $0x1], 1 }

</bundles_post_ra>
